<compile_context>
chip_gen: v6e
topology: v6e:2x2x1
jax: 0.10.0
libtpu: 0.0.40
codegen_flags: <defaults>
</compile_context>

<pallas_src>
import math
import functools

import jax
import jax.numpy as jnp
from jax import lax
from jax.experimental import pallas as pl
from jax.experimental.pallas import tpu as pltpu


# -----------------------------------------------------------------------------
# Fused Block kernel (one batch element): conv3x3+bias+ReLU -> conv3x3+bias,
# channel-major, 9 shifted tap-matmuls per conv, no scratch buffers.
# -----------------------------------------------------------------------------
def _block_kernel(x_ref, w1_ref, b1_ref, w2_ref, b2_ref, o_ref, *, H, W):
    # x_ref : (Cin, H*W)   NCHW image with spatial flattened on the lane axis
    # w1_ref: (9, C, Cin)  per-tap transposed conv1 weights (tap t = kh*3+kw)
    # b1_ref: (C, 1)
    # w2_ref: (9, C, C)    per-tap transposed conv2 weights
    # b2_ref: (C, 1)
    # o_ref : (C, L2)      "wide" conv2 output (row stride W); cropped in wrapper
    C = b1_ref.shape[0]
    H1, W1 = H - 2, W - 2
    H2, W2 = H - 4, W - 4
    L1 = (H1 - 1) * W + W1          # last needed conv1 flat index + 1
    L2 = (H2 - 1) * W + W2          # last needed conv2 flat index + 1

    x = x_ref[...]                  # (Cin, H*W), dense 128-lane loads

    # ---- conv1 + bias + ReLU: accumulate 9 tap matmuls (spatial on lanes) ----
    acc1 = jnp.zeros((C, L1), jnp.float32)
    for kh in range(3):
        for kw in range(3):
            t = kh * 3 + kw
            s = kh * W + kw                         # constant flat shift
            acc1 = acc1 + jnp.dot(w1_ref[t], x[:, s:s + L1],
                                  preferred_element_type=jnp.float32)
    # Columns >= W1 of each row are garbage but are never read by conv2's
    # valid outputs.  Intermediate never leaves VMEM/vregs.
    h = jnp.maximum(acc1 + b1_ref[...], 0.0)        # (C, L1)

    # ---- conv2 + bias: same trick over the resident intermediate -----------
    acc2 = jnp.zeros((C, L2), jnp.float32)
    for kh in range(3):
        for kw in range(3):
            t = kh * 3 + kw
            s = kh * W + kw
            acc2 = acc2 + jnp.dot(w2_ref[t], h[:, s:s + L2],
                                  preferred_element_type=jnp.float32)

    # Single lane-dense output store (L2 > 128).
    o_ref[...] = acc2 + b2_ref[...]


# -----------------------------------------------------------------------------
# Wrapper: NCHW public interface, one fused pallas_call, no transposes.
# -----------------------------------------------------------------------------
def block_forward(x_nchw, w1, b1, w2, b2):
    """x_nchw: (N, Cin, H, W) f32. w*: HWIO (3,3,ci,co). b*: (co,). -> NCHW."""
    N, Cin, H, W = x_nchw.shape
    C = w1.shape[-1]
    H2, W2 = H - 4, W - 4
    L2 = (H2 - 1) * W + W2

    x_flat = x_nchw.reshape(N, Cin, H * W)                    # free view of NCHW
    # Per-tap transposed weights: w1t[t, co, ci] = w1[kh, kw, ci, co].
    w1t = jnp.transpose(w1, (0, 1, 3, 2)).reshape(9, C, Cin)
    w2t = jnp.transpose(w2, (0, 1, 3, 2)).reshape(9, C, C)
    b1r = b1.reshape(C, 1)
    b2r = b2.reshape(C, 1)

    kernel = functools.partial(_block_kernel, H=H, W=W)

    y_flat = pl.pallas_call(
        kernel,
        out_shape=jax.ShapeDtypeStruct((N, C, L2), jnp.float32),
        grid=(N,),
        in_specs=[
            pl.BlockSpec((None, Cin, H * W), lambda n: (n, 0, 0)),  # x (per image)
            pl.BlockSpec((9, C, Cin), lambda n: (0, 0, 0)),         # w1 taps
            pl.BlockSpec((C, 1), lambda n: (0, 0)),                 # b1
            pl.BlockSpec((9, C, C), lambda n: (0, 0, 0)),           # w2 taps
            pl.BlockSpec((C, 1), lambda n: (0, 0)),                 # b2
        ],
        out_specs=pl.BlockSpec((None, C, L2), lambda n: (n, 0, 0)),
        compiler_params=pltpu.CompilerParams(
            dimension_semantics=("parallel",)),                     # batch on both TCs
    )(x_flat, w1t, b1r, w2t, b2r)

    # Un-stride the "wide" output: flat index = oh*W + ow  ->  (H2, W2).
    # Output is tiny; this pad/reshape/slice is negligible.
    y = jnp.pad(y_flat, ((0, 0), (0, 0), (0, H2 * W - L2)))
    y = y.reshape(N, C, H2, W)[:, :, :, :W2]
    return y                                                       # already NCHW


# -----------------------------------------------------------------------------
# Deterministic parameter init (PyTorch Conv2d-style uniform bounds)
# -----------------------------------------------------------------------------
def init_conv(key, cin, cout):
    k = 1.0 / math.sqrt(cin * 3 * 3)
    kw_, kb_ = jax.random.split(key)
    w = jax.random.uniform(kw_, (3, 3, cin, cout), jnp.float32, -k, k)  # HWIO
    b = jax.random.uniform(kb_, (cout,), jnp.float32, -k, k)
    return w, b


# -----------------------------------------------------------------------------
# Pure-JAX reference (for correctness check)
# -----------------------------------------------------------------------------
def ref_block(x_nchw, w1, b1, w2, b2):
    x = jnp.transpose(x_nchw, (0, 2, 3, 1))
    dn = ("NHWC", "HWIO", "NHWC")
    h = lax.conv_general_dilated(
        x, w1, (1, 1), "VALID", dimension_numbers=dn,
        precision=lax.Precision.HIGHEST) + b1.reshape(1, 1, 1, -1)
    h = jnp.maximum(h, 0.0)
    y = lax.conv_general_dilated(
        h, w2, (1, 1), "VALID", dimension_numbers=dn,
        precision=lax.Precision.HIGHEST) + b2.reshape(1, 1, 1, -1)
    return jnp.transpose(y, (0, 3, 1, 2))


if __name__ == "__main__":
    key = jax.random.PRNGKey(0)
    k_x, k_w1, k_w2 = jax.random.split(key, 3)

    # Small shapes consistent with the module: Block(3 -> 16), 16x16 input.
    N, Cin, H, W = 2, 3, 16, 16
    C = 16

    w1, b1 = init_conv(k_w1, Cin, C)
    w2, b2 = init_conv(k_w2, C, C)
    x = jax.random.normal(k_x, (N, Cin, H, W), dtype=jnp.float32)

    y = block_forward(x, w1, b1, w2, b2)
    y = jax.block_until_ready(y)

    y_ref = ref_block(x, w1, b1, w2, b2)
    assert y.shape == y_ref.shape == (N, C, H - 4, W - 4), (y.shape, y_ref.shape)
    max_err = float(jnp.max(jnp.abs(y - y_ref)))
    # Kernel dots run at default MXU precision (bf16-mantissa passes with f32
    # accumulation) -> allow a modest tolerance vs. the HIGHEST-precision ref.
    assert jnp.allclose(y, y_ref, atol=2e-2, rtol=2e-2), max_err

    print("KERNEL_OK")
</pallas_src>

<mosaic_0001>
module attributes {stable_mosaic.version = 11 : i64} {
  func.func @_block_kernel(%arg0: i32, %arg1: memref<1x3x256xf32, #tpu.memory_space<vmem>>, %arg2: memref<9x16x3xf32, #tpu.memory_space<vmem>>, %arg3: memref<16x1xf32, #tpu.memory_space<vmem>>, %arg4: memref<9x16x16xf32, #tpu.memory_space<vmem>>, %arg5: memref<16x1xf32, #tpu.memory_space<vmem>>, %arg6: memref<1x16x188xf32, #tpu.memory_space<vmem>>) attributes {dimension_semantics = [#tpu.dimension_semantics<parallel>], iteration_bounds = array<i64: 2>, scalar_prefetch = 0 : i64, scratch_operands = 0 : i64, tpu.core_type = #tpu.core_type<tc>, window_params = [{transform_indices = @transform_0, window_bounds = array<i64: 1, 3, 256>}, {pipeline_mode = #tpu.pipeline_mode<synchronous>, transform_indices = @transform_1, window_bounds = array<i64: 9, 16, 3>}, {pipeline_mode = #tpu.pipeline_mode<synchronous>, transform_indices = @transform_2, window_bounds = array<i64: 16, 1>}, {pipeline_mode = #tpu.pipeline_mode<synchronous>, transform_indices = @transform_3, window_bounds = array<i64: 9, 16, 16>}, {pipeline_mode = #tpu.pipeline_mode<synchronous>, transform_indices = @transform_4, window_bounds = array<i64: 16, 1>}, {transform_indices = @transform_5, window_bounds = array<i64: 1, 16, 188>}]} {
    %c0 = arith.constant 0 : index
    %c0_0 = arith.constant 0 : index
    %c0_1 = arith.constant 0 : index
    %0 = vector.load %arg1[%c0, %c0_0, %c0_1] : memref<1x3x256xf32, #tpu.memory_space<vmem>>, vector<1x3x256xf32>
    %1 = vector.shape_cast %0 : vector<1x3x256xf32> to vector<3x256xf32>
    %cst = arith.constant 0.000000e+00 : f32
    %2 = vector.broadcast %cst : f32 to vector<16x222xf32>
    %c0_2 = arith.constant 0 : index
    %c0_3 = arith.constant 0 : index
    %c0_4 = arith.constant 0 : index
    %3 = vector.load %arg2[%c0_2, %c0_3, %c0_4] : memref<9x16x3xf32, #tpu.memory_space<vmem>>, vector<1x16x3xf32>
    %4 = vector.shape_cast %3 : vector<1x16x3xf32> to vector<16x3xf32>
    %5 = vector.extract_strided_slice %1 {offsets = [0, 0], sizes = [3, 222], strides = [1, 1]} : vector<3x256xf32> to vector<3x222xf32>
    %cst_5 = arith.constant dense<0.000000e+00> : vector<16x222xf32>
    %6 = tpu.matmul %4, %5, %cst_5 {dimension_numbers = #tpu.dot_dimension_numbers<[1], [0], [0], [1], [0, 0, 1, 1], [], []>} : vector<16x3xf32>, vector<3x222xf32>, vector<16x222xf32> -> vector<16x222xf32>
    %7 = arith.addf %2, %6 : vector<16x222xf32>
    %c1 = arith.constant 1 : index
    %c0_6 = arith.constant 0 : index
    %c0_7 = arith.constant 0 : index
    %8 = vector.load %arg2[%c1, %c0_6, %c0_7] : memref<9x16x3xf32, #tpu.memory_space<vmem>>, vector<1x16x3xf32>
    %9 = vector.shape_cast %8 : vector<1x16x3xf32> to vector<16x3xf32>
    %10 = vector.extract_strided_slice %1 {offsets = [0, 1], sizes = [3, 222], strides = [1, 1]} : vector<3x256xf32> to vector<3x222xf32>
    %cst_8 = arith.constant dense<0.000000e+00> : vector<16x222xf32>
    %11 = tpu.matmul %9, %10, %cst_8 {dimension_numbers = #tpu.dot_dimension_numbers<[1], [0], [0], [1], [0, 0, 1, 1], [], []>} : vector<16x3xf32>, vector<3x222xf32>, vector<16x222xf32> -> vector<16x222xf32>
    %12 = arith.addf %7, %11 : vector<16x222xf32>
    %c2 = arith.constant 2 : index
    %c0_9 = arith.constant 0 : index
    %c0_10 = arith.constant 0 : index
    %13 = vector.load %arg2[%c2, %c0_9, %c0_10] : memref<9x16x3xf32, #tpu.memory_space<vmem>>, vector<1x16x3xf32>
    %14 = vector.shape_cast %13 : vector<1x16x3xf32> to vector<16x3xf32>
    %15 = vector.extract_strided_slice %1 {offsets = [0, 2], sizes = [3, 222], strides = [1, 1]} : vector<3x256xf32> to vector<3x222xf32>
    %cst_11 = arith.constant dense<0.000000e+00> : vector<16x222xf32>
    %16 = tpu.matmul %14, %15, %cst_11 {dimension_numbers = #tpu.dot_dimension_numbers<[1], [0], [0], [1], [0, 0, 1, 1], [], []>} : vector<16x3xf32>, vector<3x222xf32>, vector<16x222xf32> -> vector<16x222xf32>
    %17 = arith.addf %12, %16 : vector<16x222xf32>
    %c3 = arith.constant 3 : index
    %c0_12 = arith.constant 0 : index
    %c0_13 = arith.constant 0 : index
    %18 = vector.load %arg2[%c3, %c0_12, %c0_13] : memref<9x16x3xf32, #tpu.memory_space<vmem>>, vector<1x16x3xf32>
    %19 = vector.shape_cast %18 : vector<1x16x3xf32> to vector<16x3xf32>
    %20 = vector.extract_strided_slice %1 {offsets = [0, 16], sizes = [3, 222], strides = [1, 1]} : vector<3x256xf32> to vector<3x222xf32>
    %cst_14 = arith.constant dense<0.000000e+00> : vector<16x222xf32>
    %21 = tpu.matmul %19, %20, %cst_14 {dimension_numbers = #tpu.dot_dimension_numbers<[1], [0], [0], [1], [0, 0, 1, 1], [], []>} : vector<16x3xf32>, vector<3x222xf32>, vector<16x222xf32> -> vector<16x222xf32>
    %22 = arith.addf %17, %21 : vector<16x222xf32>
    %c4 = arith.constant 4 : index
    %c0_15 = arith.constant 0 : index
    %c0_16 = arith.constant 0 : index
    %23 = vector.load %arg2[%c4, %c0_15, %c0_16] : memref<9x16x3xf32, #tpu.memory_space<vmem>>, vector<1x16x3xf32>
    %24 = vector.shape_cast %23 : vector<1x16x3xf32> to vector<16x3xf32>
    %25 = vector.extract_strided_slice %1 {offsets = [0, 17], sizes = [3, 222], strides = [1, 1]} : vector<3x256xf32> to vector<3x222xf32>
    %cst_17 = arith.constant dense<0.000000e+00> : vector<16x222xf32>
    %26 = tpu.matmul %24, %25, %cst_17 {dimension_numbers = #tpu.dot_dimension_numbers<[1], [0], [0], [1], [0, 0, 1, 1], [], []>} : vector<16x3xf32>, vector<3x222xf32>, vector<16x222xf32> -> vector<16x222xf32>
    %27 = arith.addf %22, %26 : vector<16x222xf32>
    %c5 = arith.constant 5 : index
    %c0_18 = arith.constant 0 : index
    %c0_19 = arith.constant 0 : index
    %28 = vector.load %arg2[%c5, %c0_18, %c0_19] : memref<9x16x3xf32, #tpu.memory_space<vmem>>, vector<1x16x3xf32>
    %29 = vector.shape_cast %28 : vector<1x16x3xf32> to vector<16x3xf32>
    %30 = vector.extract_strided_slice %1 {offsets = [0, 18], sizes = [3, 222], strides = [1, 1]} : vector<3x256xf32> to vector<3x222xf32>
    %cst_20 = arith.constant dense<0.000000e+00> : vector<16x222xf32>
    %31 = tpu.matmul %29, %30, %cst_20 {dimension_numbers = #tpu.dot_dimension_numbers<[1], [0], [0], [1], [0, 0, 1, 1], [], []>} : vector<16x3xf32>, vector<3x222xf32>, vector<16x222xf32> -> vector<16x222xf32>
    %32 = arith.addf %27, %31 : vector<16x222xf32>
    %c6 = arith.constant 6 : index
    %c0_21 = arith.constant 0 : index
    %c0_22 = arith.constant 0 : index
    %33 = vector.load %arg2[%c6, %c0_21, %c0_22] : memref<9x16x3xf32, #tpu.memory_space<vmem>>, vector<1x16x3xf32>
    %34 = vector.shape_cast %33 : vector<1x16x3xf32> to vector<16x3xf32>
    %35 = vector.extract_strided_slice %1 {offsets = [0, 32], sizes = [3, 222], strides = [1, 1]} : vector<3x256xf32> to vector<3x222xf32>
    %cst_23 = arith.constant dense<0.000000e+00> : vector<16x222xf32>
    %36 = tpu.matmul %34, %35, %cst_23 {dimension_numbers = #tpu.dot_dimension_numbers<[1], [0], [0], [1], [0, 0, 1, 1], [], []>} : vector<16x3xf32>, vector<3x222xf32>, vector<16x222xf32> -> vector<16x222xf32>
    %37 = arith.addf %32, %36 : vector<16x222xf32>
    %c7 = arith.constant 7 : index
    %c0_24 = arith.constant 0 : index
    %c0_25 = arith.constant 0 : index
    %38 = vector.load %arg2[%c7, %c0_24, %c0_25] : memref<9x16x3xf32, #tpu.memory_space<vmem>>, vector<1x16x3xf32>
    %39 = vector.shape_cast %38 : vector<1x16x3xf32> to vector<16x3xf32>
    %40 = vector.extract_strided_slice %1 {offsets = [0, 33], sizes = [3, 222], strides = [1, 1]} : vector<3x256xf32> to vector<3x222xf32>
    %cst_26 = arith.constant dense<0.000000e+00> : vector<16x222xf32>
    %41 = tpu.matmul %39, %40, %cst_26 {dimension_numbers = #tpu.dot_dimension_numbers<[1], [0], [0], [1], [0, 0, 1, 1], [], []>} : vector<16x3xf32>, vector<3x222xf32>, vector<16x222xf32> -> vector<16x222xf32>
    %42 = arith.addf %37, %41 : vector<16x222xf32>
    %c8 = arith.constant 8 : index
    %c0_27 = arith.constant 0 : index
    %c0_28 = arith.constant 0 : index
    %43 = vector.load %arg2[%c8, %c0_27, %c0_28] : memref<9x16x3xf32, #tpu.memory_space<vmem>>, vector<1x16x3xf32>
    %44 = vector.shape_cast %43 : vector<1x16x3xf32> to vector<16x3xf32>
    %45 = vector.extract_strided_slice %1 {offsets = [0, 34], sizes = [3, 222], strides = [1, 1]} : vector<3x256xf32> to vector<3x222xf32>
    %cst_29 = arith.constant dense<0.000000e+00> : vector<16x222xf32>
    %46 = tpu.matmul %44, %45, %cst_29 {dimension_numbers = #tpu.dot_dimension_numbers<[1], [0], [0], [1], [0, 0, 1, 1], [], []>} : vector<16x3xf32>, vector<3x222xf32>, vector<16x222xf32> -> vector<16x222xf32>
    %47 = arith.addf %42, %46 : vector<16x222xf32>
    %c0_30 = arith.constant 0 : index
    %c0_31 = arith.constant 0 : index
    %48 = vector.load %arg3[%c0_30, %c0_31] : memref<16x1xf32, #tpu.memory_space<vmem>>, vector<16x1xf32>
    %49 = vector.broadcast %48 : vector<16x1xf32> to vector<16x222xf32>
    %50 = arith.addf %47, %49 : vector<16x222xf32>
    %cst_32 = arith.constant 0.000000e+00 : f32
    %51 = vector.broadcast %cst_32 : f32 to vector<16x222xf32>
    %52 = arith.maximumf %50, %51 : vector<16x222xf32>
    %cst_33 = arith.constant 0.000000e+00 : f32
    %53 = vector.broadcast %cst_33 : f32 to vector<16x188xf32>
    %c0_34 = arith.constant 0 : index
    %c0_35 = arith.constant 0 : index
    %c0_36 = arith.constant 0 : index
    %54 = vector.load %arg4[%c0_34, %c0_35, %c0_36] : memref<9x16x16xf32, #tpu.memory_space<vmem>>, vector<1x16x16xf32>
    %55 = vector.shape_cast %54 : vector<1x16x16xf32> to vector<16x16xf32>
    %56 = vector.extract_strided_slice %52 {offsets = [0, 0], sizes = [16, 188], strides = [1, 1]} : vector<16x222xf32> to vector<16x188xf32>
    %cst_37 = arith.constant dense<0.000000e+00> : vector<16x188xf32>
    %57 = tpu.matmul %55, %56, %cst_37 {dimension_numbers = #tpu.dot_dimension_numbers<[1], [0], [0], [1], [0, 0, 1, 1], [], []>} : vector<16x16xf32>, vector<16x188xf32>, vector<16x188xf32> -> vector<16x188xf32>
    %58 = arith.addf %53, %57 : vector<16x188xf32>
    %c1_38 = arith.constant 1 : index
    %c0_39 = arith.constant 0 : index
    %c0_40 = arith.constant 0 : index
    %59 = vector.load %arg4[%c1_38, %c0_39, %c0_40] : memref<9x16x16xf32, #tpu.memory_space<vmem>>, vector<1x16x16xf32>
    %60 = vector.shape_cast %59 : vector<1x16x16xf32> to vector<16x16xf32>
    %61 = vector.extract_strided_slice %52 {offsets = [0, 1], sizes = [16, 188], strides = [1, 1]} : vector<16x222xf32> to vector<16x188xf32>
    %cst_41 = arith.constant dense<0.000000e+00> : vector<16x188xf32>
    %62 = tpu.matmul %60, %61, %cst_41 {dimension_numbers = #tpu.dot_dimension_numbers<[1], [0], [0], [1], [0, 0, 1, 1], [], []>} : vector<16x16xf32>, vector<16x188xf32>, vector<16x188xf32> -> vector<16x188xf32>
    %63 = arith.addf %58, %62 : vector<16x188xf32>
    %c2_42 = arith.constant 2 : index
    %c0_43 = arith.constant 0 : index
    %c0_44 = arith.constant 0 : index
    %64 = vector.load %arg4[%c2_42, %c0_43, %c0_44] : memref<9x16x16xf32, #tpu.memory_space<vmem>>, vector<1x16x16xf32>
    %65 = vector.shape_cast %64 : vector<1x16x16xf32> to vector<16x16xf32>
    %66 = vector.extract_strided_slice %52 {offsets = [0, 2], sizes = [16, 188], strides = [1, 1]} : vector<16x222xf32> to vector<16x188xf32>
    %cst_45 = arith.constant dense<0.000000e+00> : vector<16x188xf32>
    %67 = tpu.matmul %65, %66, %cst_45 {dimension_numbers = #tpu.dot_dimension_numbers<[1], [0], [0], [1], [0, 0, 1, 1], [], []>} : vector<16x16xf32>, vector<16x188xf32>, vector<16x188xf32> -> vector<16x188xf32>
    %68 = arith.addf %63, %67 : vector<16x188xf32>
    %c3_46 = arith.constant 3 : index
    %c0_47 = arith.constant 0 : index
    %c0_48 = arith.constant 0 : index
    %69 = vector.load %arg4[%c3_46, %c0_47, %c0_48] : memref<9x16x16xf32, #tpu.memory_space<vmem>>, vector<1x16x16xf32>
    %70 = vector.shape_cast %69 : vector<1x16x16xf32> to vector<16x16xf32>
    %71 = vector.extract_strided_slice %52 {offsets = [0, 16], sizes = [16, 188], strides = [1, 1]} : vector<16x222xf32> to vector<16x188xf32>
    %cst_49 = arith.constant dense<0.000000e+00> : vector<16x188xf32>
    %72 = tpu.matmul %70, %71, %cst_49 {dimension_numbers = #tpu.dot_dimension_numbers<[1], [0], [0], [1], [0, 0, 1, 1], [], []>} : vector<16x16xf32>, vector<16x188xf32>, vector<16x188xf32> -> vector<16x188xf32>
    %73 = arith.addf %68, %72 : vector<16x188xf32>
    %c4_50 = arith.constant 4 : index
    %c0_51 = arith.constant 0 : index
    %c0_52 = arith.constant 0 : index
    %74 = vector.load %arg4[%c4_50, %c0_51, %c0_52] : memref<9x16x16xf32, #tpu.memory_space<vmem>>, vector<1x16x16xf32>
    %75 = vector.shape_cast %74 : vector<1x16x16xf32> to vector<16x16xf32>
    %76 = vector.extract_strided_slice %52 {offsets = [0, 17], sizes = [16, 188], strides = [1, 1]} : vector<16x222xf32> to vector<16x188xf32>
    %cst_53 = arith.constant dense<0.000000e+00> : vector<16x188xf32>
    %77 = tpu.matmul %75, %76, %cst_53 {dimension_numbers = #tpu.dot_dimension_numbers<[1], [0], [0], [1], [0, 0, 1, 1], [], []>} : vector<16x16xf32>, vector<16x188xf32>, vector<16x188xf32> -> vector<16x188xf32>
    %78 = arith.addf %73, %77 : vector<16x188xf32>
    %c5_54 = arith.constant 5 : index
    %c0_55 = arith.constant 0 : index
    %c0_56 = arith.constant 0 : index
    %79 = vector.load %arg4[%c5_54, %c0_55, %c0_56] : memref<9x16x16xf32, #tpu.memory_space<vmem>>, vector<1x16x16xf32>
    %80 = vector.shape_cast %79 : vector<1x16x16xf32> to vector<16x16xf32>
    %81 = vector.extract_strided_slice %52 {offsets = [0, 18], sizes = [16, 188], strides = [1, 1]} : vector<16x222xf32> to vector<16x188xf32>
    %cst_57 = arith.constant dense<0.000000e+00> : vector<16x188xf32>
    %82 = tpu.matmul %80, %81, %cst_57 {dimension_numbers = #tpu.dot_dimension_numbers<[1], [0], [0], [1], [0, 0, 1, 1], [], []>} : vector<16x16xf32>, vector<16x188xf32>, vector<16x188xf32> -> vector<16x188xf32>
    %83 = arith.addf %78, %82 : vector<16x188xf32>
    %c6_58 = arith.constant 6 : index
    %c0_59 = arith.constant 0 : index
    %c0_60 = arith.constant 0 : index
    %84 = vector.load %arg4[%c6_58, %c0_59, %c0_60] : memref<9x16x16xf32, #tpu.memory_space<vmem>>, vector<1x16x16xf32>
    %85 = vector.shape_cast %84 : vector<1x16x16xf32> to vector<16x16xf32>
    %86 = vector.extract_strided_slice %52 {offsets = [0, 32], sizes = [16, 188], strides = [1, 1]} : vector<16x222xf32> to vector<16x188xf32>
    %cst_61 = arith.constant dense<0.000000e+00> : vector<16x188xf32>
    %87 = tpu.matmul %85, %86, %cst_61 {dimension_numbers = #tpu.dot_dimension_numbers<[1], [0], [0], [1], [0, 0, 1, 1], [], []>} : vector<16x16xf32>, vector<16x188xf32>, vector<16x188xf32> -> vector<16x188xf32>
    %88 = arith.addf %83, %87 : vector<16x188xf32>
    %c7_62 = arith.constant 7 : index
    %c0_63 = arith.constant 0 : index
    %c0_64 = arith.constant 0 : index
    %89 = vector.load %arg4[%c7_62, %c0_63, %c0_64] : memref<9x16x16xf32, #tpu.memory_space<vmem>>, vector<1x16x16xf32>
    %90 = vector.shape_cast %89 : vector<1x16x16xf32> to vector<16x16xf32>
    %91 = vector.extract_strided_slice %52 {offsets = [0, 33], sizes = [16, 188], strides = [1, 1]} : vector<16x222xf32> to vector<16x188xf32>
    %cst_65 = arith.constant dense<0.000000e+00> : vector<16x188xf32>
    %92 = tpu.matmul %90, %91, %cst_65 {dimension_numbers = #tpu.dot_dimension_numbers<[1], [0], [0], [1], [0, 0, 1, 1], [], []>} : vector<16x16xf32>, vector<16x188xf32>, vector<16x188xf32> -> vector<16x188xf32>
    %93 = arith.addf %88, %92 : vector<16x188xf32>
    %c8_66 = arith.constant 8 : index
    %c0_67 = arith.constant 0 : index
    %c0_68 = arith.constant 0 : index
    %94 = vector.load %arg4[%c8_66, %c0_67, %c0_68] : memref<9x16x16xf32, #tpu.memory_space<vmem>>, vector<1x16x16xf32>
    %95 = vector.shape_cast %94 : vector<1x16x16xf32> to vector<16x16xf32>
    %96 = vector.extract_strided_slice %52 {offsets = [0, 34], sizes = [16, 188], strides = [1, 1]} : vector<16x222xf32> to vector<16x188xf32>
    %cst_69 = arith.constant dense<0.000000e+00> : vector<16x188xf32>
    %97 = tpu.matmul %95, %96, %cst_69 {dimension_numbers = #tpu.dot_dimension_numbers<[1], [0], [0], [1], [0, 0, 1, 1], [], []>} : vector<16x16xf32>, vector<16x188xf32>, vector<16x188xf32> -> vector<16x188xf32>
    %98 = arith.addf %93, %97 : vector<16x188xf32>
    %c0_70 = arith.constant 0 : index
    %c0_71 = arith.constant 0 : index
    %99 = vector.load %arg5[%c0_70, %c0_71] : memref<16x1xf32, #tpu.memory_space<vmem>>, vector<16x1xf32>
    %100 = vector.broadcast %99 : vector<16x1xf32> to vector<16x188xf32>
    %101 = arith.addf %98, %100 : vector<16x188xf32>
    %c0_72 = arith.constant 0 : index
    %c0_73 = arith.constant 0 : index
    %c0_74 = arith.constant 0 : index
    %102 = vector.load %arg6[%c0_72, %c0_73, %c0_74] : memref<1x16x188xf32, #tpu.memory_space<vmem>>, vector<1x16x188xf32>
    %103 = vector.shape_cast %102 : vector<1x16x188xf32> to vector<16x188xf32>
    %104 = vector.shape_cast %101 : vector<16x188xf32> to vector<1x16x188xf32>
    tpu.vector_store %arg6[%c0_72, %c0_73, %c0_74], %104 {strides = array<i32>} : memref<1x16x188xf32, #tpu.memory_space<vmem>>, vector<1x16x188xf32>,
    return
  }
  func.func @transform_0(%arg0: i32) -> (i32, i32, i32) {
    %c0_i32 = arith.constant 0 : i32
    %c0_i32_0 = arith.constant 0 : i32
    %c0_i32_1 = arith.constant 0 : i32
    return %arg0, %c0_i32, %c0_i32_0 : i32, i32, i32
  }
  func.func @transform_1(%arg0: i32) -> (i32, i32, i32) {
    %c0_i32 = arith.constant 0 : i32
    %c0_i32_0 = arith.constant 0 : i32
    %c0_i32_1 = arith.constant 0 : i32
    %c0_i32_2 = arith.constant 0 : i32
    return %c0_i32, %c0_i32_0, %c0_i32_1 : i32, i32, i32
  }
  func.func @transform_2(%arg0: i32) -> (i32, i32) {
    %c0_i32 = arith.constant 0 : i32
    %c0_i32_0 = arith.constant 0 : i32
    %c0_i32_1 = arith.constant 0 : i32
    return %c0_i32, %c0_i32_0 : i32, i32
  }
  func.func @transform_3(%arg0: i32) -> (i32, i32, i32) {
    %c0_i32 = arith.constant 0 : i32
    %c0_i32_0 = arith.constant 0 : i32
    %c0_i32_1 = arith.constant 0 : i32
    %c0_i32_2 = arith.constant 0 : i32
    return %c0_i32, %c0_i32_0, %c0_i32_1 : i32, i32, i32
  }
  func.func @transform_4(%arg0: i32) -> (i32, i32) {
    %c0_i32 = arith.constant 0 : i32
    %c0_i32_0 = arith.constant 0 : i32
    %c0_i32_1 = arith.constant 0 : i32
    return %c0_i32, %c0_i32_0 : i32, i32
  }
  func.func @transform_5(%arg0: i32) -> (i32, i32, i32) {
    %c0_i32 = arith.constant 0 : i32
    %c0_i32_0 = arith.constant 0 : i32
    %c0_i32_1 = arith.constant 0 : i32
    return %arg0, %c0_i32, %c0_i32_0 : i32, i32, i32
  }
}

</mosaic_0001>

<bundles_post_ra>
// kernel: tpu_custom_call.1
= control target key start
LH: loop header
LB: loop body
LE: loop exit
PB: predicated region body
PF: predicated region fallthrough
CT: control target
= control target key end

     0   :  { %10 = vsyncpa [#allocation3], 0  ;;  %s2818_s0 = inlined_call_operand.vmem [shape: f32[2,3,256], index: 0, kind: input, shape index: {}]   ;;  %s2819_s1 = inlined_call_operand.vmem [shape: f32[9,16,3], index: 1, kind: input, shape index: {}]   ;;  %s2820_s2 = inlined_call_operand.vmem [shape: f32[16,1], index: 2, kind: input, shape index: {}]   ;;  %s2821_s3 = inlined_call_operand.vmem [shape: f32[9,16,16], index: 3, kind: input, shape index: {}]   ;;  %s2822_s4 = inlined_call_operand.vmem [shape: f32[16,1], index: 4, kind: input, shape index: {}]   ;;  %s2823_s5 = inlined_call_operand.hbm [shape: f32[2,16,188], index: 5, kind: output, shape index: {}]  }
   0x1   :  { %12 = vsyncpa [#allocation3 + $0x1], 0  ;;  %s2407_s18 = smov 0   ;;  %s2409_s19 = smov 0  }
   0x2   :  { %s2411_s20 = smov 0   ;;  %s2413_s21 = smov 0  }
   0x3 LB: > { %s2428_s22 = sadd.s32 4294967295, %s2362_s21   ;;  %s2148_s23 = sadd.s32 4294967294, %s2362_s21   ;;  %s2362_s21 = sphi %s2413_s21, %s2829_s21   ;;  %s2358_s20 = sphi %s2411_s20, %s2828_s20   ;;  %s2354_s19 = sphi %s2409_s19, %s2827_s19   ;;  %s2350_s18 = sphi %s2407_s18, %s2826_s18  }
   0x4   : > { %s2432_s24 = sadd.s32 1, %s2362_s21   ;;  %s135_s25 = sadd.s32 1, %s2358_s20 }
   0x5   : > { %s132_s26 = ssub.s32 %s2362_s21, %s2432_s24  ;;  %p145_p0 = scmp.ne.s32.totalorder %s2358_s20, %s2354_s19 }
   0x6   : > { %p133_p1 = scmp.eq.s32.totalorder %s132_s26, 0  ;;  %p146_p2 = scmp.eq.s32.totalorder %s2428_s22, 1 }
   0x7   : > { %p151_p3 = scmp.ne.s32.totalorder %s2354_s19, %s2350_s18  ;;  %p152_p4 = scmp.eq.s32.totalorder %s2148_s23, 1 }
   0x8   : > { %s2443_s27 = scalar_select %p133_p1, %s2358_s20, %s135_s25  }
   0x9   : > { %p2445_p5 = por %p146_p2, %p145_p0  ;;  %p2449_p6 = por %p152_p4, %p151_p3 }
   0xa   : > { %p2151_p7 = scmp.ge.s32.totalorder %s2362_s21, 1  ;;  %p190_p8 = scmp.lt.s32.totalorder %s2362_s21, 3 }
   0xc   : > { %p191_p9 = pnand %p2151_p7, %p190_p8 }
   0xd   : > { %p218_p10 = scmp.lt.s32.totalorder (!%p191_p9), %s2428_s22, 1  ;;  %s2365_s10 = smov (!%p191_p9), 126  }
   0xe   : > { %194 = sbr.rel (%p191_p9) target bundleno = 772 (0x304), region = 40  ;;  %s2366_s11 = smov (!%p191_p9), 127  }
   0xf   : > { %s2367_s16 = smov (!%p191_p9), 112   ;;  %s2368_s17 = smov (!%p191_p9), 111  }
  0x10   : > { %s2369_s23 = smov (!%p191_p9), 110   ;;  %s2370_s25 = smov (!%p191_p9), 96  }
  0x11   : > { %s2371_s26 = smov (!%p191_p9), 95   ;;  %s2374_s13 = smov (!%p191_p9), [#allocation2]  }
  0x12   : > { %s2306_s14 = sshll.u32 (!%p191_p9), %s2374_s13, 4  ;;  %s2307_s14 = int_to_ptr.vmem [resolvable:$false] %s2306_s14 }
  0x13   : > { %v2364_v0 = vmov 0.0   ;;  %s219_s30 = scalar_select %p218_p10, %s2428_s22, 1  ;;  %vm244_vm0 = vcmask 1042432   ;;  %vm237_vm1 = vcmask 23552   ;;  %v224_v3 = vld [vmem:[%s2819_s1] sm:$0xff]  ;;  %v225_v4 = vld [vmem:[%s2819_s1 + $0x8] sm:$0xff] }
  0x14   : > { %313 = vmatprep.mubr.f32.mxu0 %v2364_v0  ;;  %400 = vmatprep.mubr.f32.mxu1 %v2364_v0  ;;  %v1113_v5 = vld [vmem:[%s2820_s2] sm:$0xff]  ;;  %v1114_v6 = vld [vmem:[%s2820_s2 + $0x8] sm:$0xff]  ;;  %v2373_v7 = vmov 0   ;;  %vm420_vm2 = vcmask 1031168   ;;  %vm235_vm3 = vcmask 1039360   ;;  %v2155_v12 = vld [vmem:[%s2819_s1 + $0x10] sm:$0xff] }
  0x15   : > { %s2246_s6 = sshll.u32 %s219_s30, 3  ;;  %s2372_s30 = smov 94   ;;  %2300 = vset.pattern.permute.xlu1 %v2373_v7  ;;  %2299 = vset.pattern.permute.xlu0 %v2373_v7  ;;  %vm520_vm4 = vcmask 916480   ;;  %v2156_v15 = vld [vmem:[%s2819_s1 + $0x18] sm:$0xff]  ;;  %v2171_v18 = vld [vmem:[%s2819_s1 + $0x30] sm:$0xff]  ;;  %vm620_vm5 = vcmask 908288  }
  0x16   : > { %s222_s9 = scalar_lea.vmem %s2818_s0, %s2246_s6  ;;  %v2165_v20 = vld [vmem:[%s2819_s1 + $0x20] sm:$0xff]  ;;  %v2172_v23 = vld [vmem:[%s2819_s1 + $0x38] sm:$0xff]  ;;  %vm720_vm6 = vcmask 900096   ;;  %v2166_v25 = vld [vmem:[%s2819_s1 + $0x28] sm:$0xff]  ;;  %vm820_vm7 = vcmask 785408   ;;  %vm920_vm8 = vcmask 777216  }
  0x17   : > { %v223_v1 = vld [vmem:[%s222_s9] sm:$0x77]  ;;  %v2183_v28 = vld [vmem:[%s2819_s1 + $0x50] sm:$0xff]  ;;  %v2184_v33 = vld [vmem:[%s2819_s1 + $0x58] sm:$0xff]  ;;  %vm1020_vm9 = vcmask 769024   ;;  %vm1156_vm10 = vcmask 130048  }
  0x18   : > { %416 = vrot.lane.b32.xlu1 %v223_v1, %s2365_s10  ;;  %231 = vrot.lane.b32.xlu0 %v223_v1, %s2366_s11  ;;  %v230_v2 = vcombine.high %v223_v1, %v223_v1  ;;  %v2177_v30 = vld [vmem:[%s2819_s1 + $0x40] sm:$0xff]  ;;  %v2178_v35 = vld [vmem:[%s2819_s1 + $0x48] sm:$0xff]  ;;  %vm2068_vm11 = vcmask 490496   ;;  %s2247_s6 = sshll.u32 %s2428_s22, 9  ;;  %s2308_s15 = scalar_lea.vmem %s2307_s14, 1024 }
  0x19   : > { %v2195_v38 = vld [vmem:[%s2819_s1 + $0x70] sm:$0xff]  ;;  %v2189_v40 = vld [vmem:[%s2819_s1 + $0x60] sm:$0xff]  ;;  %v2196_v43 = vld [vmem:[%s2819_s1 + $0x78] sm:$0xff]  ;;  %s2773_s9 = scalar_lea.hbm %s2823_s5, %s2247_s6 }
  0x1a   : > { %2161 = vmatprep.subr.msk.mxu1 %vm244_vm0, %v230_v2  ;;  %v2190_v45 = vld [vmem:[%s2819_s1 + $0x68] sm:$0xff]  ;;  %v2201_v46 = vld [vmem:[%s2819_s1 + $0x80] sm:$0xff] }
  0x1b   : > { %2162 = vmatpush1.msk.msra.mxu1 %vm244_vm0, %v223_v1  ;;  %v2202_v47 = vld [vmem:[%s2819_s1 + $0x88] sm:$0xff] }
  0x1c   : > { %418 = vrot.lane.b32.xlu1 %v230_v2, %s2365_s10  ;;  %233 = vrot.lane.b32.xlu0 %v230_v2, %s2366_s11 }
  0x1d   : > { %2163 = vmatmul.mubr.msk.f32.vlgmr.msra.gmra.mxu1 %vm237_vm1, %v224_v3 }
  0x1e   : > { %406 = vmatprep.mubr.f32.mxu1 %v2364_v0 }
  0x20   : > { %518 = vrot.lane.b32.xlu1 %v230_v2, %s2367_s16  ;;  %516 = vrot.lane.b32.xlu0 %v223_v1, %s2367_s16 }
  0x21   : > { %2164 = vmatmul.mubr.msk.f32.gmra.mxu1 %vm237_vm1, %v225_v4 }
  0x22   : > { %596 = vmatprep.mubr.f32.mxu1 %v2364_v0 }
  0x24   : > { %618 = vrot.lane.b32.xlu1 %v230_v2, %s2368_s17  ;;  %616 = vrot.lane.b32.xlu0 %v223_v1, %s2368_s17 }
  0x28   : > { %718 = vrot.lane.b32.xlu1 %v230_v2, %s2369_s23  ;;  %716 = vrot.lane.b32.xlu0 %v223_v1, %s2369_s23 }
  0x2c   : > { %818 = vrot.lane.b32.xlu1 %v230_v2, %s2370_s25  ;;  %816 = vrot.lane.b32.xlu0 %v223_v1, %s2370_s25 }
  0x30   : > { %918 = vrot.lane.b32.xlu1 %v230_v2, %s2371_s26  ;;  %916 = vrot.lane.b32.xlu0 %v223_v1, %s2371_s26 }
  0x34   : > { %1018 = vrot.lane.b32.xlu1 %v230_v2, %s2372_s30  ;;  %1016 = vrot.lane.b32.xlu0 %v223_v1, %s2372_s30 }
  0x38   : > { %1117 = vperm.xlu1 %2300, %v1113_v5   ;;  %1122 = vperm.xlu0 %2299, %v1114_v6  }
  0x8a   : > { %v417_v8 = vpop.permute.xlu1 %416  ;;  %v232_v9 = vpop.permute.xlu0 %231 }
  0x8e   : > { %v419_v10 = vpop.permute.xlu1 %418  ;;  %v234_v11 = vpop.permute.xlu0 %233 }
  0x8f   : > { %v421_v13 = vsel %vm420_vm2, %v417_v8, %v419_v10  ;;  %2157 = vmatprep.subr.msk.mxu0 %vm244_vm0, %v234_v11  ;;  %v236_v14 = vsel %vm235_vm3, %v232_v9, %v234_v11 }
  0x90   : > { %2158 = vmatpush1.msk.msra.mxu0 %vm244_vm0, %v236_v14 }
  0x91   : > { %2159 = vmatmul.mubr.msk.f32.vlgmr.msra.gmra.mxu0 %vm237_vm1, %v2155_v12  ;;  %2167 = vmatprep.subr.msk.mxu0 %vm244_vm0, %v419_v10 }
  0x92   : > { %2168 = vmatpush1.msk.msra.mxu0 %vm244_vm0, %v421_v13  ;;  %319 = vmatprep.mubr.f32.mxu0 %v2364_v0  ;;  %v519_v16 = vpop.permute.xlu1 %518  ;;  %v517_v17 = vpop.permute.xlu0 %516 }
  0x93   : > { %v521_v19 = vsel %vm520_vm4, %v517_v17, %v519_v16  ;;  %2173 = vmatprep.subr.msk.mxu1 %vm244_vm0, %v519_v16 }
  0x94   : > { %2174 = vmatpush1.msk.msra.mxu1 %vm244_vm0, %v521_v19 }
  0x95   : > { %2160 = vmatmul.mubr.msk.f32.gmra.mxu0 %vm237_vm1, %v2156_v15  ;;  %2175 = vmatmul.mubr.msk.f32.vlgmr.msra.gmra.mxu1 %vm237_vm1, %v2171_v18 }
  0x96   : > { %496 = vmatprep.mubr.f32.mxu0 %v2364_v0  ;;  %v619_v21 = vpop.permute.xlu1 %618  ;;  %v617_v22 = vpop.permute.xlu0 %616  ;;  %602 = vmatprep.mubr.f32.mxu1 %v2364_v0 }
  0x97   : > { %v621_v24 = vsel %vm620_vm5, %v617_v22, %v619_v21  ;;  %2179 = vmatprep.subr.msk.mxu0 %vm244_vm0, %v619_v21 }
  0x99   : > { %2169 = vmatmul.mubr.msk.f32.vlgmr.msra.gmra.mxu0 %vm237_vm1, %v2165_v20  ;;  %2176 = vmatmul.mubr.msk.f32.gmra.mxu1 %vm237_vm1, %v2172_v23 }
  0x9a   : > { %502 = vmatprep.mubr.f32.mxu0 %v2364_v0  ;;  %2180 = vmatpush1.msk.msra.mxu0 %vm244_vm0, %v621_v24  ;;  %v719_v26 = vpop.permute.xlu1 %718  ;;  %v717_v27 = vpop.permute.xlu0 %716 }
  0x9b   : > { %v721_v29 = vsel %vm720_vm6, %v717_v27, %v719_v26  ;;  %2185 = vmatprep.subr.msk.mxu1 %vm244_vm0, %v719_v26  ;;  %796 = vmatprep.mubr.f32.mxu1 %v2364_v0 }
  0x9c   : > { %2186 = vmatpush1.msk.msra.mxu1 %vm244_vm0, %v721_v29 }
  0x9d   : > { %2170 = vmatmul.mubr.msk.f32.gmra.mxu0 %vm237_vm1, %v2166_v25  ;;  %2187 = vmatmul.mubr.msk.f32.vlgmr.msra.gmra.mxu1 %vm237_vm1, %v2183_v28 }
  0x9e   : > { %696 = vmatprep.mubr.f32.mxu0 %v2364_v0  ;;  %v819_v31 = vpop.permute.xlu1 %818  ;;  %v817_v32 = vpop.permute.xlu0 %816  ;;  %802 = vmatprep.mubr.f32.mxu1 %v2364_v0 }
  0x9f   : > { %v821_v34 = vsel %vm820_vm7, %v817_v32, %v819_v31  ;;  %2191 = vmatprep.subr.msk.mxu0 %vm244_vm0, %v819_v31 }
  0xa1   : > { %2181 = vmatmul.mubr.msk.f32.vlgmr.msra.gmra.mxu0 %vm237_vm1, %v2177_v30  ;;  %2188 = vmatmul.mubr.msk.f32.gmra.mxu1 %vm237_vm1, %v2184_v33 }
  0xa2   : > { %702 = vmatprep.mubr.f32.mxu0 %v2364_v0  ;;  %2192 = vmatpush1.msk.msra.mxu0 %vm244_vm0, %v821_v34  ;;  %v919_v36 = vpop.permute.xlu1 %918  ;;  %v917_v37 = vpop.permute.xlu0 %916 }
  0xa3   : > { %v921_v39 = vsel %vm920_vm8, %v917_v37, %v919_v36  ;;  %2197 = vmatprep.subr.msk.mxu1 %vm244_vm0, %v919_v36  ;;  %996 = vmatprep.mubr.f32.mxu1 %v2364_v0 }
  0xa4   : > { %2198 = vmatpush1.msk.msra.mxu1 %vm244_vm0, %v921_v39 }
  0xa5   : > { %2182 = vmatmul.mubr.msk.f32.gmra.mxu0 %vm237_vm1, %v2178_v35  ;;  %2199 = vmatmul.mubr.msk.f32.vlgmr.msra.gmra.mxu1 %vm237_vm1, %v2195_v38 }
  0xa6   : > { %896 = vmatprep.mubr.f32.mxu0 %v2364_v0  ;;  %v1019_v41 = vpop.permute.xlu1 %1018  ;;  %v1017_v42 = vpop.permute.xlu0 %1016  ;;  %1002 = vmatprep.mubr.f32.mxu1 %v2364_v0 }
  0xa7   : > { %v1021_v44 = vsel %vm1020_vm9, %v1017_v42, %v1019_v41  ;;  %2203 = vmatprep.subr.msk.mxu0 %vm244_vm0, %v1019_v41 }
  0xa9   : > { %2193 = vmatmul.mubr.msk.f32.vlgmr.msra.gmra.mxu0 %vm237_vm1, %v2189_v40  ;;  %2200 = vmatmul.mubr.msk.f32.gmra.mxu1 %vm237_vm1, %v2196_v43 }
  0xaa   : > { %902 = vmatprep.mubr.f32.mxu0 %v2364_v0  ;;  %2204 = vmatpush1.msk.msra.mxu0 %vm244_vm0, %v1021_v44 }
  0xab   : > { %1227 = vmatprep.mubr.f32.mxu1 %v2364_v0 }
  0xad   : > { %2194 = vmatmul.mubr.msk.f32.gmra.mxu0 %vm237_vm1, %v2190_v45 }
  0xae   : > { %1096 = vmatprep.mubr.f32.mxu0 %v2364_v0 }
  0xb1   : > { %2205 = vmatmul.mubr.msk.f32.vlgmr.msra.gmra.mxu0 %vm237_vm1, %v2201_v46 }
  0xb2   : > { %1102 = vmatprep.mubr.f32.mxu0 %v2364_v0 }
  0xb3   : > { %v1118_v41 = vpop.permute.xlu1 %1117 }
  0xb5   : > { %2206 = vmatmul.mubr.msk.f32.gmra.mxu0 %vm237_vm1, %v2202_v47 }
  0xb6   : > { %1310 = vmatprep.mubr.f32.mxu0 %v2364_v0 }
  0xdd   : > { %v402_v48 = vpop.f32.mrf.mxu1 }
  0xdf   : > { %v404_v49 = vpop.f32.mrf.mxu1 }
  0xe1   : > { %v408_v50 = vpop.f32.mrf.mxu1 }
  0xe3   : > { %v410_v53 = vpop.f32.mrf.mxu1 }
 0x151   : > { %v315_v51 = vpop.f32.mrf.mxu0 }
 0x152   : > { %v403_v1 = vadd.f32 %v402_v48, %v315_v51 }
 0x153   : > { %v317_v52 = vpop.f32.mrf.mxu0 }
 0x154   : > { %v405_v4 = vadd.f32 %v404_v49, %v317_v52 }
 0x155   : > { %v321_v54 = vpop.f32.mrf.mxu0  ;;  %v598_v55 = vpop.f32.mrf.mxu1 }
 0x156   : > { %v409_v8 = vadd.f32 %v408_v50, %v321_v54 }
 0x157   : > { %v323_v56 = vpop.f32.mrf.mxu0  ;;  %v600_v57 = vpop.f32.mrf.mxu1 }
 0x158   : > { %v411_v12 = vadd.f32 %v410_v53, %v323_v56 }
 0x159   : > { %v498_v58 = vpop.f32.mrf.mxu0  ;;  %v604_v59 = vpop.f32.mrf.mxu1 }
 0x15a   : > { %v509_v5 = vadd.f32 %v498_v58, %v403_v1  ;;  %v1134_v1 = vld [vmem:[%s2821_s3 + $0x8] sm:$0xff] }
 0x15b   : > { %v500_v60 = vpop.f32.mrf.mxu0  ;;  %v606_v61 = vpop.f32.mrf.mxu1 }
 0x15c   : > { %v510_v9 = vadd.f32 %v500_v60, %v405_v4  ;;  %v609_v13 = vadd.f32 %v598_v55, %v509_v5  ;;  %v1123_v55 = vpop.permute.xlu0 %1122 }
 0x15d   : > { %v504_v62 = vpop.f32.mrf.mxu0  ;;  %v798_v63 = vpop.f32.mrf.mxu1 }
 0x15e   : > { %v511_v14 = vadd.f32 %v504_v62, %v409_v8  ;;  %v610_v16 = vadd.f32 %v600_v57, %v510_v9 }
 0x15f   : > { %v506_v2 = vpop.f32.mrf.mxu0  ;;  %v800_v3 = vpop.f32.mrf.mxu1 }
 0x160   : > { %v512_v17 = vadd.f32 %v506_v2, %v411_v12  ;;  %v611_v21 = vadd.f32 %v604_v59, %v511_v14  ;;  %v2051_v2 = vld [vmem:[%s2822_s4] sm:$0xff] }
 0x161   : > { %v698_v6 = vpop.f32.mrf.mxu0  ;;  %v804_v7 = vpop.f32.mrf.mxu1 }
 0x162   : > { %v709_v18 = vadd.f32 %v698_v6, %v609_v13  ;;  %v612_v24 = vadd.f32 %v606_v61, %v512_v17 }
 0x163   : > { %v700_v10 = vpop.f32.mrf.mxu0  ;;  %v806_v11 = vpop.f32.mrf.mxu1 }
 0x164   : > { %v710_v22 = vadd.f32 %v700_v10, %v610_v16  ;;  %v809_v25 = vadd.f32 %v798_v63, %v709_v18  ;;  %v1133_v63 = vld [vmem:[%s2821_s3] sm:$0xff] }
 0x165   : > { %v704_v15 = vpop.f32.mrf.mxu0  ;;  %v998_v20 = vpop.f32.mrf.mxu1 }
 0x166   : > { %v711_v26 = vadd.f32 %v704_v15, %v611_v21  ;;  %v810_v29 = vadd.f32 %v800_v3, %v710_v22  ;;  %v2052_v3 = vld [vmem:[%s2822_s4 + $0x8] sm:$0xff] }
 0x167   : > { %v706_v19 = vpop.f32.mrf.mxu0  ;;  %v1000_v28 = vpop.f32.mrf.mxu1 }
 0x168   : > { %v712_v30 = vadd.f32 %v706_v19, %v612_v24  ;;  %v811_v33 = vadd.f32 %v804_v7, %v711_v26  ;;  %v2208_v24 = vld [vmem:[%s2821_s3 + $0x18] sm:$0xff] }
 0x169   : > { %v898_v23 = vpop.f32.mrf.mxu0  ;;  %v1004_v36 = vpop.f32.mrf.mxu1 }
 0x16a   : > { %v909_v31 = vadd.f32 %v898_v23, %v809_v25  ;;  %v812_v37 = vadd.f32 %v806_v11, %v712_v30 }
 0x16b   : > { %v900_v27 = vpop.f32.mrf.mxu0  ;;  %v1006_v45 = vpop.f32.mrf.mxu1 }
 0x16c   : > { %v910_v34 = vadd.f32 %v900_v27, %v810_v29  ;;  %v1009_v38 = vadd.f32 %v998_v20, %v909_v31  ;;  %v2207_v20 = vld [vmem:[%s2821_s3 + $0x10] sm:$0xff] }
 0x16d   : > { %v904_v32 = vpop.f32.mrf.mxu0 }
 0x16e   : > { %v911_v39 = vadd.f32 %v904_v32, %v811_v33  ;;  %v1010_v42 = vadd.f32 %v1000_v28, %v910_v34  ;;  %v2213_v28 = vld [vmem:[%s2821_s3 + $0x20] sm:$0xff]  ;;  %v2214_v33 = vld [vmem:[%s2821_s3 + $0x28] sm:$0xff]  ;;  %v2217_v34 = vld [vmem:[%s2821_s3 + $0x30] sm:$0xff] }
 0x16f   : > { %v906_v35 = vpop.f32.mrf.mxu0 }
 0x170   : > { %v912_v43 = vadd.f32 %v906_v35, %v812_v37  ;;  %v1011_v47 = vadd.f32 %v1004_v36, %v911_v39  ;;  %v2218_v39 = vld [vmem:[%s2821_s3 + $0x38] sm:$0xff] }
 0x171   : > { %v1098_v40 = vpop.f32.mrf.mxu0 }
 0x172   : > { %v1109_v44 = vadd.f32 %v1098_v40, %v1009_v38  ;;  %v1012_v51 = vadd.f32 %v1006_v45, %v912_v43  ;;  %v2221_v40 = vld [vmem:[%s2821_s3 + $0x40] sm:$0xff]  ;;  %v2222_v45 = vld [vmem:[%s2821_s3 + $0x48] sm:$0xff] }
 0x173   : > { %v1100_v46 = vpop.f32.mrf.mxu0 }
 0x174   : > { %v1125_v48 = vadd.f32 %v1118_v41, %v1109_v44  ;;  %v1110_v49 = vadd.f32 %v1100_v46, %v1010_v42  ;;  %v2225_v46 = vld [vmem:[%s2821_s3 + $0x50] sm:$0xff] }
 0x175   : > { %v1104_v50 = vpop.f32.mrf.mxu0 }
 0x176   : > { %v1129_v52 = vmax.f32 %v1125_v48, 0.0  ;;  %v1126_v53 = vadd.f32 %v1118_v41, %v1110_v49  ;;  %v1111_v54 = vadd.f32 %v1104_v50, %v1011_v47 }
 0x177   : > { %v1106_v56 = vpop.f32.mrf.mxu0 }
 0x178   : > { %v1130_v57 = vmax.f32 %v1126_v53, 0.0  ;;  %v1112_v58 = vadd.f32 %v1106_v56, %v1012_v51  ;;  %1142 = vrot.lane.b32.xlu1 %v1129_v52, %s2366_s11  ;;  %v1127_v59 = vadd.f32 %v1123_v55, %v1111_v54  ;;  %v2226_v51 = vld [vmem:[%s2821_s3 + $0x58] sm:$0xff] }
 0x17a   : > { %v1128_v60 = vadd.f32 %v1123_v55, %v1112_v58  ;;  %1144 = vrot.lane.b32.xlu0 %v1130_v57, %s2366_s11  ;;  %v1131_v62 = vmax.f32 %v1127_v59, 0.0  ;;  %v2233_v58 = vld [vmem:[%s2821_s3 + $0x70] sm:$0xff] }
 0x17c   : > { %v1132_v61 = vmax.f32 %v1128_v60, 0.0  ;;  %1326 = vrot.lane.b32.xlu1 %v1129_v52, %s2365_s10 }
 0x17e   : > { %1274 = vmatprep.subr.mxu0 %v1132_v61  ;;  %1328 = vrot.lane.b32.xlu0 %v1130_v57, %s2365_s10 }
 0x17f   : > { %1275 = vmatpush1.msra.mxu0 %v1131_v62 }
 0x180   : > { %1276 = vmatprep.subr.mxu0 %v1130_v57  ;;  %1430 = vrot.lane.b32.xlu1 %v1129_v52, %s2367_s16 }
 0x181   : > { %1277 = vmatpush1.msra.mxu0 %v1129_v52 }
 0x182   : > { %1432 = vrot.lane.b32.xlu0 %v1130_v57, %s2367_s16  ;;  %2211 = vmatmul.mubr.msk.f32.vlgmr.msra.gmra.mxu0 %vm1156_vm10, %v1133_v63 }
 0x183   : > { %1316 = vmatprep.mubr.f32.mxu0 %v2364_v0 }
 0x184   : > { %1534 = vrot.lane.b32.xlu1 %v1129_v52, %s2368_s17 }
 0x186   : > { %1536 = vrot.lane.b32.xlu0 %v1130_v57, %s2368_s17  ;;  %2212 = vmatmul.mubr.msk.f32.gmra.mxu0 %vm1156_vm10, %v1134_v1 }
 0x187   : > { %1514 = vmatprep.mubr.f32.mxu0 %v2364_v0 }
 0x188   : > { %1638 = vrot.lane.b32.xlu1 %v1129_v52, %s2369_s23 }
 0x18a   : > { %1640 = vrot.lane.b32.xlu0 %v1130_v57, %s2369_s23 }
 0x18c   : > { %1742 = vrot.lane.b32.xlu1 %v1129_v52, %s2370_s25 }
 0x18e   : > { %1744 = vrot.lane.b32.xlu0 %v1130_v57, %s2370_s25 }
 0x190   : > { %1146 = vrot.lane.b32.xlu1 %v1131_v62, %s2366_s11 }
 0x192   : > { %1148 = vrot.lane.b32.xlu0 %v1132_v61, %s2366_s11 }
 0x194   : > { %1846 = vrot.lane.b32.xlu1 %v1129_v52, %s2371_s26 }
 0x196   : > { %1848 = vrot.lane.b32.xlu0 %v1130_v57, %s2371_s26 }
 0x198   : > { %1330 = vrot.lane.b32.xlu1 %v1131_v62, %s2365_s10 }
 0x19a   : > { %1332 = vrot.lane.b32.xlu0 %v1132_v61, %s2365_s10 }
 0x19c   : > { %1434 = vrot.lane.b32.xlu1 %v1131_v62, %s2367_s16 }
 0x19e   : > { %1436 = vrot.lane.b32.xlu0 %v1132_v61, %s2367_s16 }
 0x1a0   : > { %1538 = vrot.lane.b32.xlu1 %v1131_v62, %s2368_s17 }
 0x1a2   : > { %1540 = vrot.lane.b32.xlu0 %v1132_v61, %s2368_s17 }
 0x1a4   : > { %1642 = vrot.lane.b32.xlu1 %v1131_v62, %s2369_s23 }
 0x1a6   : > { %1644 = vrot.lane.b32.xlu0 %v1132_v61, %s2369_s23  ;;  %s215_s23 = sand.u32 1, %s2354_s19  }
 0x1a7   : > { %s2778_s22 = scalar_lea.sflag [#allocation3], %s215_s23 }
 0x1a8   : > { %1746 = vrot.lane.b32.xlu1 %v1131_v62, %s2370_s25 }
 0x1aa   : > { %1748 = vrot.lane.b32.xlu0 %v1132_v61, %s2370_s25  ;;  %s2152_s25 = sshll.u32 %s215_s23, 5 }
 0x1ac   : > { %1850 = vrot.lane.b32.xlu1 %v1131_v62, %s2371_s26 }
 0x1ae   : > { %1852 = vrot.lane.b32.xlu0 %v1132_v61, %s2371_s26  ;;  %s217_s26 = scalar_lea.vmem [#allocation2], %s2152_s25 }
 0x1b0   : > { %1954 = vrot.lane.b32.xlu1 %v1131_v62, %s2372_s30  ;;  %v2234_v62 = vld [vmem:[%s2821_s3 + $0x78] sm:$0xff] }
 0x1b2   : > { %1956 = vrot.lane.b32.xlu0 %v1132_v61, %s2372_s30 }
 0x1b4   : > { %1950 = vrot.lane.b32.xlu1 %v1129_v52, %s2372_s30  ;;  %v2229_v52 = vld [vmem:[%s2821_s3 + $0x60] sm:$0xff] }
 0x1b6   : > { %1952 = vrot.lane.b32.xlu0 %v1130_v57, %s2372_s30  ;;  %v2230_v57 = vld [vmem:[%s2821_s3 + $0x68] sm:$0xff]  ;;  %s2086_s30 = sshll.u32 %s217_s26, 4  ;;  %s2768_s30 = int_to_ptr.vmem [resolvable:$true] %s2086_s30 }
 0x1b7   : > { %s2302_s12 = scalar_lea.vmem %s2768_s30, 512  ;;  %p2309_p0 = scmp.lt.s32.totalorder %s2768_s30, %s2307_s14 }
 0x1b8   : > { %2055 = vperm.xlu1 %2300, %v2051_v2   ;;  %v2237_v2 = vld [vmem:[%s2821_s3 + $0x80] sm:$0xff]  ;;  %p2303_p11 = scmp.ne.s32.totalorder %s2768_s30, %s2302_s12  ;;  %p2310_p1 = scmp.lt.s32.totalorder %s2308_s15, %s2302_s12 }
 0x1ba   : > { %2060 = vperm.xlu0 %2299, %v2052_v3   ;;  %p2304_p12 = pnand %p2303_p11, %p2445_p5  ;;  %p2311_p2 = por %p2310_p1, %p2309_p0 }
 0x1bc   : > { %p2305_p13 = pneg %p2304_p12 }
 0x1be   : > { %p2312_p3 = pnand %p2311_p2, %p2305_p13 }
 0x1ea   : > { %v1143_v4 = vpop.permute.xlu1 %1142 }
 0x1ec   : > { %v1145_v5 = vpop.permute.xlu0 %1144 }
 0x1ed   : > { %v1150_v21 = vsel %vm235_vm3, %v1143_v4, %v1145_v5  ;;  %v2238_v4 = vld [vmem:[%s2821_s3 + $0x88] sm:$0xff] }
 0x1ee   : > { %v1327_v6 = vpop.permute.xlu1 %1326 }
 0x1f0   : > { %v1329_v7 = vpop.permute.xlu0 %1328 }
 0x1f1   : > { %v1334_v29 = vsel %vm420_vm2, %v1327_v6, %v1329_v7 }
 0x1f2   : > { %v1431_v8 = vpop.permute.xlu1 %1430 }
 0x1f4   : > { %v1433_v9 = vpop.permute.xlu0 %1432 }
 0x1f5   : > { %v1438_v35 = vsel %vm520_vm4, %v1431_v8, %v1433_v9 }
 0x1f6   : > { %v1535_v10 = vpop.permute.xlu1 %1534 }
 0x1f8   : > { %v1537_v11 = vpop.permute.xlu0 %1536 }
 0x1f9   : > { %v1542_v41 = vsel %vm620_vm5, %v1535_v10, %v1537_v11 }
 0x1fa   : > { %v2648_v12 = vpop.permute.xlu1 %1638 }
 0x1fc   : > { %v2650_v13 = vpop.permute.xlu0 %1640 }
 0x1fd   : > { %v1646_v47 = vsel %vm720_vm6, %v2648_v12, %v2650_v13 }
 0x1fe   : > { %v2652_v14 = vpop.permute.xlu1 %1742 }
 0x200   : > { %v2654_v15 = vpop.permute.xlu0 %1744 }
 0x201   : > { %v1750_v53 = vsel %vm820_vm7, %v2652_v14, %v2654_v15 }
 0x202   : > { %v1147_v16 = vpop.permute.xlu1 %1146 }
 0x204   : > { %v1149_v17 = vpop.permute.xlu0 %1148 }
 0x205   : > { %v1151_v18 = vsel %vm235_vm3, %v1147_v16, %v1149_v17  ;;  %1191 = vmatprep.subr.mxu1 %v1149_v17 }
 0x206   : > { %1192 = vmatpush1.msra.mxu1 %v1151_v18  ;;  %v2657_v19 = vpop.permute.xlu1 %1846 }
 0x207   : > { %1193 = vmatprep.subr.mxu1 %v1145_v5 }
 0x208   : > { %v2663_v22 = vpop.permute.xlu0 %1848  ;;  %1194 = vmatpush1.msra.mxu1 %v1150_v21 }
 0x209   : > { %2209 = vmatmul.mubr.msk.f32.vlgmr.msra.gmra.mxu1 %vm1156_vm10, %v2207_v20  ;;  %v1854_v59 = vsel %vm920_vm8, %v2657_v19, %v2663_v22 }
 0x20a   : > { %v1331_v23 = vpop.permute.xlu1 %1330  ;;  %1233 = vmatprep.mubr.f32.mxu1 %v2364_v0 }
 0x20c   : > { %v1333_v25 = vpop.permute.xlu0 %1332 }
 0x20d   : > { %v1335_v26 = vsel %vm420_vm2, %v1331_v23, %v1333_v25  ;;  %2210 = vmatmul.mubr.msk.f32.gmra.mxu1 %vm1156_vm10, %v2208_v24  ;;  %1374 = vmatprep.subr.mxu1 %v1333_v25 }
 0x20e   : > { %1375 = vmatpush1.msra.mxu1 %v1335_v26  ;;  %v1435_v27 = vpop.permute.xlu1 %1434  ;;  %1410 = vmatprep.mubr.f32.mxu1 %v2364_v0 }
 0x20f   : > { %1376 = vmatprep.subr.mxu1 %v1329_v7 }
 0x210   : > { %v1437_v30 = vpop.permute.xlu0 %1436  ;;  %1377 = vmatpush1.msra.mxu1 %v1334_v29 }
 0x211   : > { %v1439_v31 = vsel %vm520_vm4, %v1435_v27, %v1437_v30  ;;  %2215 = vmatmul.mubr.msk.f32.vlgmr.msra.gmra.mxu1 %vm1156_vm10, %v2213_v28  ;;  %1478 = vmatprep.subr.mxu0 %v1437_v30 }
 0x212   : > { %v1539_v32 = vpop.permute.xlu1 %1538  ;;  %1479 = vmatpush1.msra.mxu0 %v1439_v31  ;;  %1416 = vmatprep.mubr.f32.mxu1 %v2364_v0 }
 0x213   : > { %1480 = vmatprep.subr.mxu0 %v1433_v9 }
 0x214   : > { %v1541_v36 = vpop.permute.xlu0 %1540  ;;  %1481 = vmatpush1.msra.mxu0 %v1438_v35 }
 0x215   : > { %v1543_v37 = vsel %vm620_vm5, %v1539_v32, %v1541_v36  ;;  %2216 = vmatmul.mubr.msk.f32.gmra.mxu1 %vm1156_vm10, %v2214_v33  ;;  %2219 = vmatmul.mubr.msk.f32.vlgmr.msra.gmra.mxu0 %vm1156_vm10, %v2217_v34 }
 0x216   : > { %1582 = vmatprep.subr.mxu1 %v1541_v36  ;;  %v1643_v38 = vpop.permute.xlu1 %1642  ;;  %1520 = vmatprep.mubr.f32.mxu0 %v2364_v0 }
 0x217   : > { %1583 = vmatpush1.msra.mxu1 %v1543_v37  ;;  %1618 = vmatprep.mubr.f32.mxu1 %v2364_v0 }
 0x218   : > { %1584 = vmatprep.subr.mxu1 %v1537_v11  ;;  %v1645_v42 = vpop.permute.xlu0 %1644 }
 0x219   : > { %v1647_v43 = vsel %vm720_vm6, %v1643_v38, %v1645_v42  ;;  %1585 = vmatpush1.msra.mxu1 %v1542_v41  ;;  %2220 = vmatmul.mubr.msk.f32.gmra.mxu0 %vm1156_vm10, %v2218_v39 }
 0x21a   : > { %2223 = vmatmul.mubr.msk.f32.vlgmr.msra.gmra.mxu1 %vm1156_vm10, %v2221_v40  ;;  %1686 = vmatprep.subr.mxu0 %v1645_v42  ;;  %v1747_v44 = vpop.permute.xlu1 %1746 }
 0x21b   : > { %1687 = vmatpush1.msra.mxu0 %v1647_v43  ;;  %1624 = vmatprep.mubr.f32.mxu1 %v2364_v0 }
 0x21c   : > { %1688 = vmatprep.subr.mxu0 %v2650_v13  ;;  %v1749_v48 = vpop.permute.xlu0 %1748  ;;  %1722 = vmatprep.mubr.f32.mxu0 %v2364_v0 }
 0x21d   : > { %v1751_v49 = vsel %vm820_vm7, %v1747_v44, %v1749_v48  ;;  %1689 = vmatpush1.msra.mxu0 %v1646_v47  ;;  %1790 = vmatprep.subr.mxu1 %v1749_v48 }
 0x21e   : > { %2224 = vmatmul.mubr.msk.f32.gmra.mxu1 %vm1156_vm10, %v2222_v45  ;;  %2227 = vmatmul.mubr.msk.f32.vlgmr.msra.gmra.mxu0 %vm1156_vm10, %v2225_v46  ;;  %v1851_v50 = vpop.permute.xlu1 %1850 }
 0x21f   : > { %1791 = vmatpush1.msra.mxu1 %v1751_v49  ;;  %1728 = vmatprep.mubr.f32.mxu0 %v2364_v0 }
 0x220   : > { %1792 = vmatprep.subr.mxu1 %v2654_v15  ;;  %v1853_v54 = vpop.permute.xlu0 %1852  ;;  %1826 = vmatprep.mubr.f32.mxu1 %v2364_v0 }
 0x221   : > { %v1855_v55 = vsel %vm920_vm8, %v1851_v50, %v1853_v54  ;;  %1793 = vmatpush1.msra.mxu1 %v1750_v53  ;;  %1894 = vmatprep.subr.mxu0 %v1853_v54 }
 0x222   : > { %2228 = vmatmul.mubr.msk.f32.gmra.mxu0 %vm1156_vm10, %v2226_v51  ;;  %2231 = vmatmul.mubr.msk.f32.vlgmr.msra.gmra.mxu1 %vm1156_vm10, %v2229_v52  ;;  %v1955_v56 = vpop.permute.xlu1 %1954 }
 0x223   : > { %1895 = vmatpush1.msra.mxu0 %v1855_v55  ;;  %1832 = vmatprep.mubr.f32.mxu1 %v2364_v0 }
 0x224   : > { %1896 = vmatprep.subr.mxu0 %v2663_v22  ;;  %v1957_v60 = vpop.permute.xlu0 %1956  ;;  %1930 = vmatprep.mubr.f32.mxu0 %v2364_v0 }
 0x225   : > { %v1959_v61 = vsel %vm1020_vm9, %v1955_v56, %v1957_v60  ;;  %1897 = vmatpush1.msra.mxu0 %v1854_v59  ;;  %1998 = vmatprep.subr.mxu1 %v1957_v60 }
 0x226   : > { %2232 = vmatmul.mubr.msk.f32.gmra.mxu1 %vm1156_vm10, %v2230_v57  ;;  %2235 = vmatmul.mubr.msk.f32.vlgmr.msra.gmra.mxu0 %vm1156_vm10, %v2233_v58  ;;  %v1951_v63 = vpop.permute.xlu1 %1950 }
 0x227   : > { %1999 = vmatpush1.msra.mxu1 %v1959_v61  ;;  %1936 = vmatprep.mubr.f32.mxu0 %v2364_v0 }
 0x228   : > { %v1953_v1 = vpop.permute.xlu0 %1952  ;;  %2034 = vmatprep.mubr.f32.mxu1 %v2364_v0 }
 0x229   : > { %v1958_v3 = vsel %vm1020_vm9, %v1951_v63, %v1953_v1  ;;  %2000 = vmatprep.subr.mxu1 %v1953_v1 }
 0x22a   : > { %2236 = vmatmul.mubr.msk.f32.gmra.mxu0 %vm1156_vm10, %v2234_v62  ;;  %2001 = vmatpush1.msra.mxu1 %v1958_v3 }
 0x22b   : > { %2239 = vmatmul.mubr.msk.f32.vlgmr.msra.gmra.mxu1 %vm1156_vm10, %v2237_v2 }
 0x22c   : > { %2040 = vmatprep.mubr.f32.mxu1 %v2364_v0 }
 0x22f   : > { %2240 = vmatmul.mubr.msk.f32.gmra.mxu1 %vm1156_vm10, %v2238_v4 }
 0x233   : > { %v2056_v58 = vpop.permute.xlu1 %2055 }
 0x242   : > { %v1312_v5 = vpop.f32.mrf.mxu0 }
 0x244   : > { %v1314_v8 = vpop.f32.mrf.mxu0 }
 0x246   : > { %v1318_v11 = vpop.f32.mrf.mxu0 }
 0x248   : > { %v1320_v13 = vpop.f32.mrf.mxu0 }
 0x2c9   : > { %v1229_v6 = vpop.f32.mrf.mxu1 }
 0x2ca   : > { %v1313_v22 = vadd.f32 %v1312_v5, %v1229_v6 }
 0x2cb   : > { %v1231_v7 = vpop.f32.mrf.mxu1 }
 0x2cc   : > { %v1315_v25 = vadd.f32 %v1314_v8, %v1231_v7 }
 0x2cd   : > { %v1235_v9 = vpop.f32.mrf.mxu1 }
 0x2ce   : > { %v1319_v29 = vadd.f32 %v1318_v11, %v1235_v9 }
 0x2cf   : > { %v1237_v10 = vpop.f32.mrf.mxu1 }
 0x2d0   : > { %v1321_v34 = vadd.f32 %v1320_v13, %v1237_v10  ;;  %v2061_v10 = vpop.permute.xlu0 %2060 }
 0x2d1   : > { %v1412_v12 = vpop.f32.mrf.mxu1 }
 0x2d2   : > { %v1423_v26 = vadd.f32 %v1412_v12, %v1313_v22 }
 0x2d3   : > { %v1414_v14 = vpop.f32.mrf.mxu1 }
 0x2d4   : > { %v1424_v30 = vadd.f32 %v1414_v14, %v1315_v25 }
 0x2d5   : > { %v1418_v15 = vpop.f32.mrf.mxu1  ;;  %v1516_v16 = vpop.f32.mrf.mxu0 }
 0x2d6   : > { %v1527_v31 = vadd.f32 %v1516_v16, %v1423_v26  ;;  %v1425_v35 = vadd.f32 %v1418_v15, %v1319_v29 }
 0x2d7   : > { %v1420_v17 = vpop.f32.mrf.mxu1  ;;  %v1518_v0 = vpop.f32.mrf.mxu0 }
 0x2d8   : > { %v1528_v36 = vadd.f32 %v1518_v0, %v1424_v30  ;;  %v1426_v40 = vadd.f32 %v1420_v17, %v1321_v34 }
 0x2d9   : > { %v1522_v18 = vpop.f32.mrf.mxu0 }
 0x2da   : > { %v1620_v19 = vpop.f32.mrf.mxu1  ;;  %v1529_v41 = vadd.f32 %v1522_v18, %v1425_v35 }
 0x2db   : > { %v1524_v20 = vpop.f32.mrf.mxu0  ;;  %v1631_v37 = vadd.f32 %v1620_v19, %v1527_v31 }
 0x2dc   : > { %v1622_v21 = vpop.f32.mrf.mxu1  ;;  %v1530_v46 = vadd.f32 %v1524_v20, %v1426_v40 }
 0x2dd   : > { %v1632_v42 = vadd.f32 %v1622_v21, %v1528_v36 }
 0x2de   : > { %v1626_v23 = vpop.f32.mrf.mxu1  ;;  %v1724_v24 = vpop.f32.mrf.mxu0 }
 0x2df   : > { %v1735_v43 = vadd.f32 %v1724_v24, %v1631_v37  ;;  %v1633_v47 = vadd.f32 %v1626_v23, %v1529_v41 }
 0x2e0   : > { %v1628_v27 = vpop.f32.mrf.mxu1  ;;  %v1726_v28 = vpop.f32.mrf.mxu0 }
 0x2e1   : > { %v1736_v48 = vadd.f32 %v1726_v28, %v1632_v42  ;;  %v1634_v52 = vadd.f32 %v1628_v27, %v1530_v46 }
 0x2e2   : > { %v1730_v32 = vpop.f32.mrf.mxu0  ;;  %v1828_v33 = vpop.f32.mrf.mxu1 }
 0x2e3   : > { %v1839_v49 = vadd.f32 %v1828_v33, %v1735_v43  ;;  %v1737_v53 = vadd.f32 %v1730_v32, %v1633_v47 }
 0x2e4   : > { %v1732_v38 = vpop.f32.mrf.mxu0  ;;  %v1830_v39 = vpop.f32.mrf.mxu1 }
 0x2e5   : > { %v1840_v54 = vadd.f32 %v1830_v39, %v1736_v48  ;;  %v1738_v59 = vadd.f32 %v1732_v38, %v1634_v52 }
 0x2e6   : > { %v1834_v44 = vpop.f32.mrf.mxu1  ;;  %v1932_v45 = vpop.f32.mrf.mxu0 }
 0x2e7   : > { %v1943_v55 = vadd.f32 %v1932_v45, %v1839_v49  ;;  %v1841_v60 = vadd.f32 %v1834_v44, %v1737_v53 }
 0x2e8   : > { %v1934_v50 = vpop.f32.mrf.mxu0  ;;  %v1836_v51 = vpop.f32.mrf.mxu1 }
 0x2e9   : > { %v1944_v61 = vadd.f32 %v1934_v50, %v1840_v54  ;;  %v1842_v2 = vadd.f32 %v1836_v51, %v1738_v59 }
 0x2ea   : > { %v1938_v56 = vpop.f32.mrf.mxu0 }
 0x2eb   : > { %v2036_v57 = vpop.f32.mrf.mxu1  ;;  %v1945_v3 = vadd.f32 %v1938_v56, %v1841_v60 }
 0x2ec   : > { %v2047_v62 = vadd.f32 %v2036_v57, %v1943_v55  ;;  %v1940_v63 = vpop.f32.mrf.mxu0 }
 0x2ed   : > { %v2038_v1 = vpop.f32.mrf.mxu1  ;;  %v1946_v7 = vadd.f32 %v1940_v63, %v1842_v2 }
 0x2ee   : > { %v2063_v4 = vadd.f32 %v2056_v58, %v2047_v62  ;;  %v2048_v5 = vadd.f32 %v2038_v1, %v1944_v61 }
 0x2ef   : > { %v2042_v6 = vpop.f32.mrf.mxu1 }
 0x2f0   : > { %2067 = vst [vmem:[%s217_s26] sm:$0xff] %v2063_v4  ;;  %v2064_v8 = vadd.f32 %v2056_v58, %v2048_v5  ;;  %v2049_v9 = vadd.f32 %v2042_v6, %v1945_v3 }
 0x2f1   : > { %v2044_v11 = vpop.f32.mrf.mxu1 }
 0x2f2   : > { %2069 = vst.msk [vmem:[%s217_s26 + $0x8] sm:$0xff] %vm2068_vm11, %v2064_v8  ;;  %v2065_v12 = vadd.f32 %v2061_v10, %v2049_v9  ;;  %v2050_v13 = vadd.f32 %v2044_v11, %v1946_v7 }
 0x2f4   : > { %2070 = vst [vmem:[%s217_s26 + $0x10] sm:$0xff] %v2065_v12  ;;  %v2066_v14 = vadd.f32 %v2061_v10, %v2050_v13 }
 0x2f6   : > { %2071 = vst.msk [vmem:[%s217_s26 + $0x18] sm:$0xff] %vm2068_vm11, %v2066_v14 }
 0x2f7   : > { %2315 = shalt.err (!%p2312_p3)
}
 0x2f8   : > { %s2316_s10 = scalar_lea.hbm %s2773_s9, 512  ;;  %s2320_s17 = scalar_lea.hbm %s2823_s5, 1024 }
 0x2f9   : > { %p2317_p4 = scmp.ne.s32.totalorder %s2773_s9, %s2316_s10  ;;  %p2321_p9 = scmp.lt.s32.totalorder %s2773_s9, %s2823_s5 }
 0x2fa   : > { %p2322_p10 = scmp.lt.s32.totalorder %s2320_s17, %s2316_s10 }
 0x2fb   : > { %p2318_p7 = pnand %p2317_p4, %p2445_p5 }
 0x2fc   : > { %p2323_p11 = por %p2322_p10, %p2321_p9 }
 0x2fd   : > { %p2319_p8 = pneg %p2318_p7 }
 0x2ff   : > { %p2324_p12 = pnand %p2323_p11, %p2319_p8 }
 0x301   : > { %2327 = shalt.err (!%p2324_p12)
}
 0x302   : > { %s2375_s26 = smov 256   ;;  %s2376_s6 = smov 16  }
 0x303   : > { %2248 = dma.vmem_to_hbm [thread:$0]  (%p2445_p5), %s2768_s30, 512, %s2773_s9, %s2778_s22, %s2375_s26, %s2375_s26, %s2376_s6  }
 0x304 PF: > { %p2254_p13 = scmp.ge.s32.totalorder %s2362_s21, 2  ;;  %s2101_s7 = sand.u32 1, %s2350_s18  }
 0x305   : > { %s2102_s8 = scalar_lea.sflag [#allocation3], %s2101_s7 }
 0x306   : > { %p2251_p0 = pnand %p2254_p13, %p2449_p6 }
 0x308   : > { %p2252_p1 = pneg %p2251_p0 }
 0x30a   : > { %2345 = dma.done.wait (%p2252_p1), %s2102_s8, 512  }
 0x30b   : > { %2347 = vsyncadd (%p2252_p1), %s2102_s8, 4294966784  ;;  %p15_p2 = scmp.ge.s32.totalorder %s2432_s24, 4   ;;  %s2826_s18 = smov %s2354_s19 }
 0x30c   : > { %s2827_s19 = smov %s2358_s20  ;;  %s2828_s20 = smov %s2443_s27 }
 0x30d   : > { %s2829_s21 = smov %s2432_s24  ;;  %17 = sbr.rel (!%p15_p2) target bundleno = 3 (0x3), region = 91 }
 0x312   :  { %2107 = vsyncpa [#allocation3], 1 }
 0x313   :  { %2109 = vsyncpa [#allocation3 + $0x1], 1 }

</bundles_post_ra>
